<compile_context>
chip_gen: v7x
topology: tpu7x:2x2x1
jax: 0.10.0
libtpu: 0.0.40
codegen_flags: <defaults>
</compile_context>

<pallas_src>
import functools

import jax
import jax.numpy as jnp
from jax.experimental import pallas as pl
from jax.experimental.pallas import tpu as pltpu

_LANE = 128        # packed width: 2*hidden == logits+value padded width
_NEG = -1e30       # "minus infinity" for masked logit columns (exp -> exactly 0)


def _slab_offsets(state_dim, hidden):
    """Row offsets of each chunk inside the packed weight slab (all 8-row aligned)."""
    h2 = 2 * hidden
    r_w2 = ((state_dim + 7) // 8) * 8
    r_w3 = r_w2 + h2
    r_b1 = r_w3 + h2
    r_b2 = r_b1 + 8
    r_b3 = r_b2 + 8
    rows = r_b3 + 8
    return r_w2, r_w3, r_b1, r_b2, r_b3, rows


def _actor_critic_kernel(state_ref, action_ref, w_ref, out_ref, *,
                         state_dim, hidden, action_dim):
    r_w2, r_w3, r_b1, r_b2, r_b3, _ = _slab_offsets(state_dim, hidden)
    h2 = 2 * hidden

    x = state_ref[...]                                   # [Bt, S] f32

    # --- packed weights (single VMEM slab, 8-row-aligned static slices) ---
    w1 = w_ref[0:state_dim, :]                           # [S, 128]   [actor1 | critic1]
    w2 = w_ref[r_w2:r_w2 + h2, :]                        # [128,128]  blockdiag(actor2, critic2)
    w3 = w_ref[r_w3:r_w3 + h2, :]                        # [128,128]  cols 0:A actor head, col 127 critic
    b1 = w_ref[r_b1:r_b1 + 1, :]                         # [1, 128]
    b2 = w_ref[r_b2:r_b2 + 1, :]
    b3 = w_ref[r_b3:r_b3 + 1, :]

    # --- fused actor|critic MLP: three lane-full matmuls ---
    a1 = jnp.tanh(jnp.dot(x, w1, preferred_element_type=jnp.float32) + b1)   # [Bt,128]
    a2 = jnp.tanh(jnp.dot(a1, w2, preferred_element_type=jnp.float32) + b2)  # [Bt,128]
    z = jnp.dot(a2, w3, preferred_element_type=jnp.float32) + b3             # [Bt,128]

    value = z[:, _LANE - 1:_LANE]                        # [Bt,1] critic output (col 127)

    # --- softmax / log-softmax over a full 128-lane block (padding masked to -1e30) ---
    col = jax.lax.broadcasted_iota(jnp.int32, z.shape, 1)        # [Bt,128]
    logits = jnp.where(col < action_dim, z, _NEG)                # mask padding + value column
    m = jnp.max(logits, axis=-1, keepdims=True)
    e = jnp.exp(logits - m)                                      # masked cols -> exactly 0
    s = jnp.sum(e, axis=-1, keepdims=True)
    probs = e / s                                                # exact divide (1e-5 tolerance)
    log_probs = (logits - m) - jnp.log(s)

    # gather log_prob(action) via one-hot (actions assumed in [0, action_dim))
    act = action_ref[...]                                        # [Bt,1] int32
    onehot = (col == act).astype(jnp.float32)
    logp = jnp.sum(onehot * log_probs, axis=-1, keepdims=True)   # [Bt,1]

    # entropy = -sum p*log p  (masked cols contribute exactly -0.0)
    ent = -jnp.sum(probs * log_probs, axis=-1, keepdims=True)    # [Bt,1]

    # single consolidated [Bt,3] output block: [logp | value | entropy]
    out_ref[:, 0:1] = logp
    out_ref[:, 1:2] = value
    out_ref[:, 2:3] = ent


def make_params(key, state_dim, action_dim, hidden=64):
    """Deterministic PyTorch-Linear-style init; weights stored as [in, out]."""
    def linear(key, fan_in, fan_out):
        k_w, k_b = jax.random.split(key)
        bound = 1.0 / jnp.sqrt(float(fan_in))
        w = jax.random.uniform(k_w, (fan_in, fan_out), jnp.float32, -bound, bound)
        b = jax.random.uniform(k_b, (1, fan_out), jnp.float32, -bound, bound)
        return w, b

    keys = jax.random.split(key, 6)
    w1a, b1a = linear(keys[0], state_dim, hidden)
    w2a, b2a = linear(keys[1], hidden, hidden)
    w3a, b3a = linear(keys[2], hidden, action_dim)
    w1c, b1c = linear(keys[3], state_dim, hidden)
    w2c, b2c = linear(keys[4], hidden, hidden)
    w3c, b3c = linear(keys[5], hidden, 1)
    return (w1a, b1a, w2a, b2a, w3a, b3a, w1c, b1c, w2c, b2c, w3c, b3c)


def pack_params(params, state_dim, action_dim, hidden=64):
    """Pack actor+critic weights/biases into ONE f32 slab (done once, outside hot path)."""
    (w1a, b1a, w2a, b2a, w3a, b3a, w1c, b1c, w2c, b2c, w3c, b3c) = params
    H = hidden
    A = action_dim
    assert 2 * H == _LANE, "packing scheme assumes hidden=64 (2*hidden == 128)"
    assert A + 1 <= _LANE

    r_w2, r_w3, r_b1, r_b2, r_b3, rows = _slab_offsets(state_dim, hidden)
    slab = jnp.zeros((rows, _LANE), jnp.float32)
    # layer 1: [S,128] = [w1a | w1c]
    slab = slab.at[0:state_dim, 0:H].set(w1a).at[0:state_dim, H:2 * H].set(w1c)
    # layer 2: blockdiag(w2a, w2c)
    slab = slab.at[r_w2:r_w2 + H, 0:H].set(w2a).at[r_w2 + H:r_w2 + 2 * H, H:2 * H].set(w2c)
    # layer 3: actor head -> cols 0:A, critic head -> col 127 (rest 0, masked in-kernel)
    slab = slab.at[r_w3:r_w3 + H, 0:A].set(w3a)
    slab = slab.at[r_w3 + H:r_w3 + 2 * H, _LANE - 1:_LANE].set(w3c)
    # biases
    slab = slab.at[r_b1, 0:H].set(b1a[0]).at[r_b1, H:2 * H].set(b1c[0])
    slab = slab.at[r_b2, 0:H].set(b2a[0]).at[r_b2, H:2 * H].set(b2c[0])
    slab = slab.at[r_b3, 0:A].set(b3a[0]).at[r_b3, _LANE - 1].set(b3c[0, 0])
    return slab


def _choose_tile(B):
    """Batch tile size: single block for small B, else >=2 tiles of <=2048 rows."""
    if B <= 256:
        return B                                   # one block; per-step overhead negligible
    MAX_TILE = 2048
    n_tiles = max(2, pl.cdiv(B, MAX_TILE))         # >=2 so v7x's two TensorCores both work
    tile = pl.cdiv(B, n_tiles)
    return min(MAX_TILE, ((tile + 7) // 8) * 8)    # sublane-aligned


@functools.partial(jax.jit, static_argnames=("action_dim",))
def actor_critic_evaluate(state, action, w_slab, *, action_dim):
    """Pallas equivalent of ActorCritic.evaluate(state, action).

    Returns (action_logprobs [B], state_value [B], dist_entropy [B])."""
    B, S = state.shape
    hidden = _LANE // 2
    action2d = action.reshape(B, 1).astype(jnp.int32)

    tile_b = _choose_tile(B)
    grid = (pl.cdiv(B, tile_b),)                   # ragged tail handled by Pallas OOB masking

    kernel = functools.partial(_actor_critic_kernel,
                               state_dim=S, hidden=hidden, action_dim=action_dim)

    in_specs = [
        pl.BlockSpec((tile_b, S), lambda i: (i, 0)),          # state
        pl.BlockSpec((tile_b, 1), lambda i: (i, 0)),          # action
        pl.BlockSpec(w_slab.shape, lambda i: (0, 0)),         # packed weights (constant block)
    ]
    out_specs = pl.BlockSpec((tile_b, 3), lambda i: (i, 0))
    out_shape = jax.ShapeDtypeStruct((B, 3), jnp.float32)

    h2 = _LANE
    cost = pl.CostEstimate(
        flops=2 * B * (S * h2 + h2 * h2 + h2 * h2),
        transcendentals=B * (2 * h2 + h2 + 1),     # tanh x2 layers + exp + log
        bytes_accessed=4 * (B * S + B + 3 * B) + 4 * int(w_slab.size),
    )

    out = pl.pallas_call(
        kernel,
        out_shape=out_shape,
        grid=grid,
        in_specs=in_specs,
        out_specs=out_specs,
        compiler_params=pltpu.CompilerParams(dimension_semantics=("parallel",)),
        cost_estimate=cost,
    )(state, action2d, w_slab)

    return out[:, 0], out[:, 1], out[:, 2]


def _reference_evaluate(state, action, params):
    (w1a, b1a, w2a, b2a, w3a, b3a, w1c, b1c, w2c, b2c, w3c, b3c) = params
    h = jnp.tanh(state @ w1a + b1a)
    h = jnp.tanh(h @ w2a + b2a)
    logits = h @ w3a + b3a
    logp_all = jax.nn.log_softmax(logits, axis=-1)
    probs = jax.nn.softmax(logits, axis=-1)
    logp = jnp.take_along_axis(logp_all, action[:, None].astype(jnp.int32), axis=-1)[:, 0]
    ent = -jnp.sum(probs * logp_all, axis=-1)
    hc = jnp.tanh(state @ w1c + b1c)
    hc = jnp.tanh(hc @ w2c + b2c)
    value = (hc @ w3c + b3c)[:, 0]
    return logp, value, ent


if __name__ == "__main__":
    key = jax.random.PRNGKey(0)
    k_params, k_state, k_action, k_state2, k_action2 = jax.random.split(key, 5)

    state_dim, action_dim = 8, 4
    params = make_params(k_params, state_dim, action_dim)
    w_slab = pack_params(params, state_dim, action_dim)

    # --- small batch: single-block path ---
    B = 8
    state = jax.random.normal(k_state, (B, state_dim), jnp.float32)
    action = jax.random.randint(k_action, (B,), 0, action_dim, jnp.int32)
    logp, value, ent = actor_critic_evaluate(state, action, w_slab, action_dim=action_dim)
    jax.block_until_ready((logp, value, ent))
    logp_r, value_r, ent_r = _reference_evaluate(state, action, params)
    assert jnp.allclose(logp, logp_r, atol=1e-5)
    assert jnp.allclose(value, value_r, atol=1e-5)
    assert jnp.allclose(ent, ent_r, atol=1e-5)

    # --- larger batch: multi-tile grid with a ragged last tile (no wrapper padding) ---
    B2 = 300
    state2 = jax.random.normal(k_state2, (B2, state_dim), jnp.float32)
    action2 = jax.random.randint(k_action2, (B2,), 0, action_dim, jnp.int32)
    logp2, value2, ent2 = actor_critic_evaluate(state2, action2, w_slab, action_dim=action_dim)
    jax.block_until_ready((logp2, value2, ent2))
    logp2_r, value2_r, ent2_r = _reference_evaluate(state2, action2, params)
    assert jnp.allclose(logp2, logp2_r, atol=1e-5)
    assert jnp.allclose(value2, value2_r, atol=1e-5)
    assert jnp.allclose(ent2, ent2_r, atol=1e-5)

    # TODO(synk): ActorCritic.act() (Categorical sampling) is not implemented; only evaluate().
    print("KERNEL_OK")
</pallas_src>

<mosaic_0001>
module attributes {stable_mosaic.version = 11 : i64} {
  func.func @_actor_critic_kernel(%arg0: i32, %arg1: memref<8x8xf32, #tpu.memory_space<vmem>>, %arg2: memref<8x1xi32, #tpu.memory_space<vmem>>, %arg3: memref<288x128xf32, #tpu.memory_space<vmem>>, %arg4: memref<8x3xf32, #tpu.memory_space<vmem>>) attributes {dimension_semantics = [#tpu.dimension_semantics<parallel>], iteration_bounds = array<i64: 1>, scalar_prefetch = 0 : i64, scratch_operands = 0 : i64, tpu.core_type = #tpu.core_type<tc>, window_params = [{transform_indices = @transform_0, window_bounds = array<i64: 8, 8>}, {transform_indices = @transform_1, window_bounds = array<i64: 8, 1>}, {pipeline_mode = #tpu.pipeline_mode<synchronous>, transform_indices = @transform_2, window_bounds = array<i64: 288, 128>}, {transform_indices = @transform_3, window_bounds = array<i64: 8, 3>}]} {
    %c0 = arith.constant 0 : index
    %c0_0 = arith.constant 0 : index
    %0 = vector.load %arg1[%c0, %c0_0] : memref<8x8xf32, #tpu.memory_space<vmem>>, vector<8x8xf32>
    %c0_1 = arith.constant 0 : index
    %c0_2 = arith.constant 0 : index
    %1 = vector.load %arg3[%c0_1, %c0_2] : memref<288x128xf32, #tpu.memory_space<vmem>>, vector<8x128xf32>
    %c8 = arith.constant 8 : index
    %c0_3 = arith.constant 0 : index
    %2 = vector.load %arg3[%c8, %c0_3] : memref<288x128xf32, #tpu.memory_space<vmem>>, vector<128x128xf32>
    %c136 = arith.constant 136 : index
    %c0_4 = arith.constant 0 : index
    %3 = vector.load %arg3[%c136, %c0_4] : memref<288x128xf32, #tpu.memory_space<vmem>>, vector<128x128xf32>
    %c264 = arith.constant 264 : index
    %c0_5 = arith.constant 0 : index
    %4 = vector.load %arg3[%c264, %c0_5] : memref<288x128xf32, #tpu.memory_space<vmem>>, vector<1x128xf32>
    %c272 = arith.constant 272 : index
    %c0_6 = arith.constant 0 : index
    %5 = vector.load %arg3[%c272, %c0_6] : memref<288x128xf32, #tpu.memory_space<vmem>>, vector<1x128xf32>
    %c280 = arith.constant 280 : index
    %c0_7 = arith.constant 0 : index
    %6 = vector.load %arg3[%c280, %c0_7] : memref<288x128xf32, #tpu.memory_space<vmem>>, vector<1x128xf32>
    %cst = arith.constant dense<0.000000e+00> : vector<8x128xf32>
    %7 = tpu.matmul %0, %1, %cst {dimension_numbers = #tpu.dot_dimension_numbers<[1], [0], [0], [1], [0, 0, 1, 1], [], []>} : vector<8x8xf32>, vector<8x128xf32>, vector<8x128xf32> -> vector<8x128xf32>
    %8 = vector.broadcast %4 : vector<1x128xf32> to vector<8x128xf32>
    %9 = arith.addf %7, %8 : vector<8x128xf32>
    %10 = math.tanh %9 : vector<8x128xf32>
    %cst_8 = arith.constant dense<0.000000e+00> : vector<8x128xf32>
    %11 = tpu.matmul %10, %2, %cst_8 {dimension_numbers = #tpu.dot_dimension_numbers<[1], [0], [0], [1], [0, 0, 1, 1], [], []>} : vector<8x128xf32>, vector<128x128xf32>, vector<8x128xf32> -> vector<8x128xf32>
    %12 = vector.broadcast %5 : vector<1x128xf32> to vector<8x128xf32>
    %13 = arith.addf %11, %12 : vector<8x128xf32>
    %14 = math.tanh %13 : vector<8x128xf32>
    %cst_9 = arith.constant dense<0.000000e+00> : vector<8x128xf32>
    %15 = tpu.matmul %14, %3, %cst_9 {dimension_numbers = #tpu.dot_dimension_numbers<[1], [0], [0], [1], [0, 0, 1, 1], [], []>} : vector<8x128xf32>, vector<128x128xf32>, vector<8x128xf32> -> vector<8x128xf32>
    %16 = vector.broadcast %6 : vector<1x128xf32> to vector<8x128xf32>
    %17 = arith.addf %15, %16 : vector<8x128xf32>
    %18 = vector.extract_strided_slice %17 {offsets = [0, 127], sizes = [8, 1], strides = [1, 1]} : vector<8x128xf32> to vector<8x1xf32>
    %19 = tpu.iota {dimensions = array<i32: 1>} : vector<8x128xi32>
    %c4_i32 = arith.constant 4 : i32
    %20 = vector.broadcast %c4_i32 : i32 to vector<8x128xi32>
    %21 = arith.cmpi slt, %19, %20 : vector<8x128xi32>
    %cst_10 = arith.constant -1.000000e+30 : f32
    %22 = vector.broadcast %cst_10 : f32 to vector<8x128xf32>
    %23 = arith.select %21, %17, %22 : vector<8x128xi1>, vector<8x128xf32>
    %cst_11 = arith.constant dense<0xFF800000> : vector<8xf32>
    %24 = vector.multi_reduction <maximumf>, %23, %cst_11 [1] : vector<8x128xf32> to vector<8xf32>
    %25 = vector.shape_cast %24 : vector<8xf32> to vector<8x1xf32>
    %26 = vector.broadcast %25 : vector<8x1xf32> to vector<8x128xf32>
    %27 = arith.subf %23, %26 : vector<8x128xf32>
    %28 = math.exp %27 : vector<8x128xf32>
    %cst_12 = arith.constant dense<0.000000e+00> : vector<8xf32>
    %29 = vector.multi_reduction <add>, %28, %cst_12 [1] : vector<8x128xf32> to vector<8xf32>
    %30 = vector.shape_cast %29 : vector<8xf32> to vector<8x1xf32>
    %31 = vector.broadcast %30 : vector<8x1xf32> to vector<8x128xf32>
    %32 = arith.divf %28, %31 : vector<8x128xf32>
    %33 = vector.broadcast %25 : vector<8x1xf32> to vector<8x128xf32>
    %34 = arith.subf %23, %33 : vector<8x128xf32>
    %35 = math.log %30 : vector<8x1xf32>
    %36 = vector.broadcast %35 : vector<8x1xf32> to vector<8x128xf32>
    %37 = arith.subf %34, %36 : vector<8x128xf32>
    %c0_13 = arith.constant 0 : index
    %c0_14 = arith.constant 0 : index
    %38 = vector.load %arg2[%c0_13, %c0_14] : memref<8x1xi32, #tpu.memory_space<vmem>>, vector<8x1xi32>
    %39 = vector.broadcast %38 : vector<8x1xi32> to vector<8x128xi32>
    %40 = arith.cmpi eq, %19, %39 : vector<8x128xi32>
    %41 = arith.extui %40 : vector<8x128xi1> to vector<8x128xi32>
    %42 = arith.sitofp %41 : vector<8x128xi32> to vector<8x128xf32>
    %43 = arith.mulf %42, %37 : vector<8x128xf32>
    %cst_15 = arith.constant dense<0.000000e+00> : vector<8xf32>
    %44 = vector.multi_reduction <add>, %43, %cst_15 [1] : vector<8x128xf32> to vector<8xf32>
    %45 = vector.shape_cast %44 : vector<8xf32> to vector<8x1xf32>
    %46 = arith.mulf %32, %37 : vector<8x128xf32>
    %cst_16 = arith.constant dense<0.000000e+00> : vector<8xf32>
    %47 = vector.multi_reduction <add>, %46, %cst_16 [1] : vector<8x128xf32> to vector<8xf32>
    %48 = vector.shape_cast %47 : vector<8xf32> to vector<8x1xf32>
    %cst_17 = arith.constant 0.000000e+00 : f32
    %49 = vector.broadcast %cst_17 : f32 to vector<8x1xf32>
    %50 = arith.subf %49, %48 : vector<8x1xf32>
    %c0_18 = arith.constant 0 : index
    %c0_19 = arith.constant 0 : index
    %51 = vector.load %arg4[%c0_18, %c0_19] : memref<8x3xf32, #tpu.memory_space<vmem>>, vector<8x1xf32>
    tpu.vector_store %arg4[%c0_18, %c0_19], %45 {strides = array<i32>} : memref<8x3xf32, #tpu.memory_space<vmem>>, vector<8x1xf32>,
    %c0_20 = arith.constant 0 : index
    %c1 = arith.constant 1 : index
    %52 = vector.load %arg4[%c0_20, %c1] : memref<8x3xf32, #tpu.memory_space<vmem>>, vector<8x1xf32>
    tpu.vector_store %arg4[%c0_20, %c1], %18 {strides = array<i32>} : memref<8x3xf32, #tpu.memory_space<vmem>>, vector<8x1xf32>,
    %c0_21 = arith.constant 0 : index
    %c2 = arith.constant 2 : index
    %53 = vector.load %arg4[%c0_21, %c2] : memref<8x3xf32, #tpu.memory_space<vmem>>, vector<8x1xf32>
    tpu.vector_store %arg4[%c0_21, %c2], %50 {strides = array<i32>} : memref<8x3xf32, #tpu.memory_space<vmem>>, vector<8x1xf32>,
    return
  }
  func.func @transform_0(%arg0: i32) -> (i32, i32) {
    %c0_i32 = arith.constant 0 : i32
    %c0_i32_0 = arith.constant 0 : i32
    return %arg0, %c0_i32 : i32, i32
  }
  func.func @transform_1(%arg0: i32) -> (i32, i32) {
    %c0_i32 = arith.constant 0 : i32
    %c0_i32_0 = arith.constant 0 : i32
    return %arg0, %c0_i32 : i32, i32
  }
  func.func @transform_2(%arg0: i32) -> (i32, i32) {
    %c0_i32 = arith.constant 0 : i32
    %c0_i32_0 = arith.constant 0 : i32
    %c0_i32_1 = arith.constant 0 : i32
    return %c0_i32, %c0_i32_0 : i32, i32
  }
  func.func @transform_3(%arg0: i32) -> (i32, i32) {
    %c0_i32 = arith.constant 0 : i32
    %c0_i32_0 = arith.constant 0 : i32
    return %arg0, %c0_i32 : i32, i32
  }
}

</mosaic_0001>

<bundles_post_ra>
// kernel: actor_critic_evaluate.1
= control target key start
LH: loop header
LB: loop body
LE: loop exit
PB: predicated region body
PF: predicated region fallthrough
CT: control target
= control target key end

     0   :  { %8 = vsyncpa [#allocation3], 0  ;;  %s546_s12 = smov [#allocation2]   ;;  %s625_s0 = inlined_call_operand.vmem [shape: f32[8,8], index: 0, kind: input, shape index: {}]   ;;  %s626_s1 = inlined_call_operand.vmem [shape: s32[8,1], index: 1, kind: input, shape index: {}]   ;;  %s627_s2 = inlined_call_operand.hbm [shape: f32[288,128], index: 2, kind: input, shape index: {}]   ;;  %s628_s3 = inlined_call_operand.vmem [shape: f32[8,3], index: 3, kind: output, shape index: {}]  }
   0x1   :  { %s18_s13 = sshll.u32 %s546_s12, 4  ;;  %s522_s16 = scalar_lea.hbm %s627_s2, 4608  ;;  %s19_s13 = int_to_ptr.vmem [resolvable:$true] %s18_s13 }
   0x2   :  { %p523_p0 = scmp.ne.s32.totalorder %s627_s2, %s522_s16  ;;  %p526_p1 = scmp.lt.u32.totalorder %s522_s16, %s627_s2 }
   0x4   :  { %p528_p2 = pnand %p526_p1, %p523_p0 }
   0x6   :  { %531 = shalt.err (!%p528_p2)
}
   0x7   :  { %s532_s21 = scalar_lea.vmem %s19_s13, 4608  ;;  %p537_p4 = scmp.lt.s32.totalorder %s19_s13, %s19_s13 }
   0x8   :  { %p533_p3 = scmp.ne.s32.totalorder %s19_s13, %s532_s21  ;;  %p538_p5 = scmp.lt.s32.totalorder %s532_s21, %s532_s21 }
   0xa   :  { %p539_p6 = por %p538_p5, %p537_p4 }
   0xc   :  { %p540_p7 = pnand %p539_p6, %p533_p3 }
   0xe   :  { %543 = shalt.err (!%p540_p7)
}
   0xf   :  { %s547_s22 = smov 128   ;;  %s548_s23 = smov 8  }
  0x10   :  { %24 = dma.hbm_to_vmem [thread:$0]  %s627_s2, 4608, %s19_s13, [#allocation3], %s547_s22, %s547_s22, %s548_s23  }
  0x11   :  { %544 = dma.done.wait [#allocation3], 4608  }
  0x12   :  { %545 = vsyncadd [#allocation3], 4294962688  ;;  %v549_v0 = vmov 0.0   ;;  %vm550_vm0 = vmmov 0   ;;  %v551_v1 = vmov 0.0|0.0   ;;  %vm69_vm1 = vcmask 64512  }
  0x13   :  { %379 = vmatprep.subr.mxu0 %v549_v0  ;;  %381 = vmatprep.mubr.msk.f32.mxu0 %vm550_vm0, %v549_v0  ;;  %v29_v2 = vld [vmem:[#allocation2] sm:$0xff]  ;;  %v30_v4 = vld [vmem:[#allocation2 + $0x8] sm:$0xff]  ;;  %v31_v5 = vld [vmem:[#allocation2 + $0x10] sm:$0xff]  ;;  %v293_v62 = vlaneseq  ;;  %vm323_vm4 = vcmask 7168   ;;  %vm329_vm5 = vcmask 15368   ;;  %vm331_vm6 = vcmask 23568  }
  0x14   :  { %454 = vmatprep.subr.bf16.mxu1 %v551_v1  ;;  %416 = vmatprep.mubr.msk.f32.mxu1 %vm550_vm0, %v549_v0  ;;  %v28_v3 = vld [vmem:[%s625_s0] sm:$0xff]  ;;  %v32_v6 = vld [vmem:[#allocation2 + $0x18] sm:$0xff]  ;;  %v455_v8 = vpack.c.bf16 %v31_v5, %v30_v4  ;;  %v34_v10 = vld [vmem:[#allocation2 + $0x28] sm:$0xff] }
  0x15   :  { %380 = vmatpush3.msra.mxu0 %v29_v2  ;;  %v33_v7 = vld [vmem:[#allocation2 + $0x20] sm:$0xff]  ;;  %v35_v11 = vld [vmem:[#allocation2 + $0x30] sm:$0xff]  ;;  %v36_v13 = vld [vmem:[#allocation2 + $0x38] sm:$0xff]  ;;  %v294_v63 = vand.u32 127, %v293_v62 }
  0x16   :  { %382 = vmatmul.mubr.msk.f32.vlgmr.msra.gmra.mrb[0].mxu0 %vm69_vm1, %v28_v3  ;;  %478 = vmatprep.subr.bf16.mxu0 %v551_v1  ;;  %v458_v9 = vpack.c.bf16 %v33_v7, %v32_v6  ;;  %v461_v12 = vpack.c.bf16 %v35_v11, %v34_v10  ;;  %v37_v14 = vld [vmem:[#allocation2 + $0x40] sm:$0xff]  ;;  %v38_v16 = vld [vmem:[#allocation2 + $0x48] sm:$0xff]  ;;  %v39_v17 = vld [vmem:[#allocation2 + $0x50] sm:$0xff]  ;;  %v552_v7 = vmov 0  }
  0x17   :  { %451 = vmatprep.mubr.msk.f32.mxu0 %vm550_vm0, %v549_v0  ;;  %456 = vmatpush3.bf16.msra.mxu1 %v455_v8  ;;  %v464_v15 = vpack.c.bf16 %v37_v14, %v36_v13  ;;  %v467_v18 = vpack.c.bf16 %v39_v17, %v38_v16  ;;  %v40_v19 = vld [vmem:[#allocation2 + $0x58] sm:$0xff]  ;;  %v41_v20 = vld [vmem:[#allocation2 + $0x60] sm:$0xff]  ;;  %v42_v22 = vld [vmem:[#allocation2 + $0x68] sm:$0xff]  ;;  %vm295_vm2 = vcmp.lt.s32.totalorder %v294_v63, 4 }
  0x18   :  { %457 = vmatprep.subr.bf16.mxu1 %v551_v1  ;;  %v470_v21 = vpack.c.bf16 %v41_v20, %v40_v19  ;;  %v43_v23 = vld [vmem:[#allocation2 + $0x70] sm:$0xff]  ;;  %v44_v25 = vld [vmem:[#allocation2 + $0x78] sm:$0xff]  ;;  %v45_v26 = vld [vmem:[#allocation2 + $0x80] sm:$0xff]  ;;  %510 = vset.pattern.permute.xlu1 %v552_v7 }
  0x19   :  { %v473_v24 = vpack.c.bf16 %v43_v23, %v42_v22  ;;  %v476_v27 = vpack.c.bf16 %v45_v26, %v44_v25  ;;  %v46_v28 = vld [vmem:[#allocation2 + $0x88] sm:$0xff]  ;;  %v47_v29 = vld [vmem:[#allocation2 + $0x90] sm:$0xff]  ;;  %v48_v30 = vld [vmem:[#allocation2 + $0x98] sm:$0xff]  ;;  %511 = vset.pattern.permute.xlu0 %v552_v7 }
  0x1a   :  { %v479_v31 = vpack.c.bf16 %v47_v29, %v46_v28  ;;  %v49_v32 = vld [vmem:[#allocation2 + $0xa0] sm:$0xff]  ;;  %v50_v34 = vld [vmem:[#allocation2 + $0xa8] sm:$0xff]  ;;  %v51_v35 = vld [vmem:[#allocation2 + $0xb0] sm:$0xff] }
  0x1b   :  { %459 = vmatpush3.bf16.msra.mxu1 %v458_v9  ;;  %v482_v33 = vpack.c.bf16 %v49_v32, %v48_v30  ;;  %v485_v36 = vpack.c.bf16 %v51_v35, %v50_v34  ;;  %v52_v37 = vld [vmem:[#allocation2 + $0xb8] sm:$0xff]  ;;  %v53_v38 = vld [vmem:[#allocation2 + $0xc0] sm:$0xff]  ;;  %v54_v40 = vld [vmem:[#allocation2 + $0xc8] sm:$0xff] }
  0x1c   :  { %460 = vmatprep.subr.bf16.mxu1 %v551_v1  ;;  %480 = vmatpush3.bf16.msra.mxu0 %v479_v31  ;;  %v488_v39 = vpack.c.bf16 %v53_v38, %v52_v37  ;;  %v55_v41 = vld [vmem:[#allocation2 + $0xd0] sm:$0xff]  ;;  %v338_v43 = vld [vmem:[#allocation2 + $0x108] ss:$0 sm:$0xff]  ;;  %v56_v48 = vld [vmem:[#allocation2 + $0xd8] sm:$0xff] }
  0x1d   :  { %481 = vmatprep.subr.bf16.mxu0 %v551_v1  ;;  %v491_v42 = vpack.c.bf16 %v55_v41, %v54_v40  ;;  %v57_v49 = vld [vmem:[#allocation2 + $0xe0] sm:$0xff]  ;;  %v58_v51 = vld [vmem:[#allocation2 + $0xe8] sm:$0xff]  ;;  %v59_v52 = vld [vmem:[#allocation2 + $0xf0] sm:$0xff] }
  0x1e   :  { %v494_v50 = vpack.c.bf16 %v57_v49, %v56_v48  ;;  %v497_v53 = vpack.c.bf16 %v59_v52, %v58_v51  ;;  %v60_v54 = vld [vmem:[#allocation2 + $0xf8] sm:$0xff]  ;;  %v61_v55 = vld [vmem:[#allocation2 + $0x100] sm:$0xff]  ;;  %v340_v57 = vld [vmem:[#allocation2 + $0x110] ss:$0 sm:$0xff] }
  0x1f   :  { %462 = vmatpush3.bf16.msra.mxu1 %v461_v12  ;;  %v500_v56 = vpack.c.bf16 %v61_v55, %v60_v54  ;;  %v341_v2 = vld [vmem:[#allocation2 + $0x118] ss:$0 sm:$0xff] }
  0x20   :  { %463 = vmatprep.subr.bf16.mxu1 %v551_v1  ;;  %483 = vmatpush3.bf16.msra.mxu0 %v482_v33 }
  0x21   :  { %484 = vmatprep.subr.bf16.mxu0 %v551_v1 }
  0x23   :  { %465 = vmatpush3.bf16.msra.mxu1 %v464_v15 }
  0x24   :  { %466 = vmatprep.subr.bf16.mxu1 %v551_v1  ;;  %486 = vmatpush3.bf16.msra.mxu0 %v485_v36 }
  0x25   :  { %487 = vmatprep.subr.bf16.mxu0 %v551_v1 }
  0x27   :  { %468 = vmatpush3.bf16.msra.mxu1 %v467_v18 }
  0x28   :  { %469 = vmatprep.subr.bf16.mxu1 %v551_v1  ;;  %489 = vmatpush3.bf16.msra.mxu0 %v488_v39 }
  0x29   :  { %490 = vmatprep.subr.bf16.mxu0 %v551_v1 }
  0x2b   :  { %471 = vmatpush3.bf16.msra.mxu1 %v470_v21 }
  0x2c   :  { %472 = vmatprep.subr.bf16.mxu1 %v551_v1  ;;  %492 = vmatpush3.bf16.msra.mxu0 %v491_v42 }
  0x2d   :  { %493 = vmatprep.subr.bf16.mxu0 %v551_v1 }
  0x2f   :  { %474 = vmatpush3.bf16.msra.mxu1 %v473_v24 }
  0x30   :  { %475 = vmatprep.subr.bf16.mxu1 %v551_v1  ;;  %495 = vmatpush3.bf16.msra.mxu0 %v494_v50 }
  0x31   :  { %496 = vmatprep.subr.bf16.mxu0 %v551_v1 }
  0x33   :  { %477 = vmatpush3.bf16.msra.mxu1 %v476_v27 }
  0x34   :  { %498 = vmatpush3.bf16.msra.mxu0 %v497_v53 }
  0x35   :  { %499 = vmatprep.subr.bf16.mxu0 %v551_v1  ;;  %v309_v1 = vld [vmem:[%s626_s1] sm:$0xff]  ;;  %s553_s1 = smov 2  }
  0x36   :  { %311 = vperm.xlu1 %510, %v309_v1  }
  0x38   :  { %501 = vmatpush3.bf16.msra.mxu0 %v500_v56 }
  0xb5   :  { %v312_v13 = vpop.permute.xlu1 %311 }
  0xb6   :  { %vm313_vm3 = vcmp.eq.s32.totalorder %v294_v63, %v312_v13 }
  0xb7   :  { %v342_v17 = vsel %vm313_vm3, 1.0, %v549_v0 }
  0xe9   :  { %v139_v44 = vpop.f32.mrb[0].mxu0 }
  0xea   :  { %v140_v45 = vadd.f32 %v338_v43, %v139_v44  ;;  %v383_v46 = vpop.f32.mrb[1].mxu0 }
  0xec   :  { %512 = vtanh.f32 %v140_v45 }
  0xf6   :  { %v513_v47 = vpop.eup %512 }
  0xf7   :  { %417 = vmatmul.mubr.f32.vlgmr.msra.gmra.mrb[0].mxu1 %v513_v47 }
 0x1ca   :  { %v214_v58 = vpop.f32.mrb[0].mxu1 }
 0x1cb   :  { %v215_v59 = vadd.f32 %v340_v57, %v214_v58  ;;  %v418_v60 = vpop.f32.mrb[1].mxu1 }
 0x1cd   :  { %514 = vtanh.f32 %v215_v59 }
 0x1d7   :  { %v515_v61 = vpop.eup %514 }
 0x1d8   :  { %452 = vmatmul.mubr.f32.vlgmr.msra.gmra.mrb[2].mxu0 %v515_v61 }
 0x2ab   :  { %v289_v3 = vpop.f32.mrb[2].mxu0 }
 0x2ac   :  { %v290_v4 = vadd.f32 %v341_v2, %v289_v3  ;;  %v453_v5 = vpop.f32.mrb[3].mxu0 }
 0x2ae   :  { %v296_v6 = vsel %vm295_vm2, %v290_v4, -1e+30 }
 0x2af   :  { %297 = vmax.xlane.f32.xlu0 %v296_v6 }
 0x33c   :  { %v298_v8 = vpop.xlane.xlu0 %297 }
 0x33d   :  { %v299_v9 = vsub.f32 %v296_v6, %v298_v8 }
 0x33f   :  { %v300_v10 = vmul.f32 1.442695, %v299_v9 }
 0x341   :  { %516 = vpow2.f32 %v300_v10 }
 0x34b   :  { %v517_v11 = vpop.eup %516 }
 0x34c   :  { %302 = vadd.xlane.f32.xlu0 %v517_v11 }
 0x3d9   :  { %v303_v12 = vpop.xlane.xlu0 %302 }
 0x3da   :  { %518 = vrcp.f32 %v303_v12 }
 0x3db   :  { %520 = vlog2.f32 %v303_v12 }
 0x3e4   :  { %v519_v14 = vpop.eup %518 }
 0x3e5   :  { %v521_v15 = vpop.eup %520  ;;  %v305_v19 = vmul.f32 %v519_v14, %v517_v11 }
 0x3e6   :  { %v307_v16 = vmul.f32 0.6931472, %v521_v15 }
 0x3e8   :  { %v308_v18 = vsub.f32 %v299_v9, %v307_v16 }
 0x3ea   :  { %v316_v20 = vmul.f32 %v342_v17, %v308_v18  ;;  %v319_v21 = vmul.f32 %v308_v18, %v305_v19 }
 0x3ec   :  { %317 = vadd.xlane.f32.xlu1 %v316_v20  ;;  %320 = vadd.xlane.f32.xlu0 %v319_v21 }
 0x402   :  { %326 = vrot.lane.b32.xlu0 %v290_v4, %s553_s1 }
 0x479   :  { %v318_v22 = vpop.xlane.xlu1 %317  ;;  %v321_v23 = vpop.xlane.xlu0 %320 }
 0x47a   :  { %324 = vst.msk [vmem:[%s628_s3] sm:$0xff] %vm323_vm4, %v318_v22  ;;  %v322_v24 = vsub.f32 0.0, %v321_v23 }
 0x47d   :  { %v327_v25 = vpop.permute.xlu0 %326 }
 0x47e   :  { %330 = vst.msk [vmem:[%s628_s3] sm:$0xff] %vm329_vm5, %v327_v25 }
 0x47f   :  { %332 = vst.msk [vmem:[%s628_s3] sm:$0xff] %vm331_vm6, %v322_v24 }
 0x480   :  { %337 = vsyncpa [#allocation3], 1 }

</bundles_post_ra>
